<compile_context>
chip_gen: v7x
topology: tpu7x:2x2x1
jax: 0.10.0
libtpu: 0.0.40
codegen_flags: <defaults>
</compile_context>

<pallas_src>
import functools
import math

import jax
import jax.numpy as jnp
from jax import lax
from jax.experimental import pallas as pl
from jax.experimental.pallas import tpu as pltpu

EPS = 1e-5


def _layernorm(x, gamma, beta):
    # x: (R, D) f32, gamma/beta: (1, D) f32
    mean = jnp.mean(x, axis=-1, keepdims=True)
    var = jnp.mean((x - mean) ** 2, axis=-1, keepdims=True)
    return (x - mean) * lax.rsqrt(var + EPS) * gamma + beta


def _gelu_exact(x):
    # PyTorch nn.GELU() default = exact (erf-based) GELU, done in f32.
    return 0.5 * x * (1.0 + lax.erf(x * 0.7071067811865476))


def encoder_kernel(x_ref,
                   g1_ref, b1_ref,
                   wqkv_ref, wo_ref,
                   g2_ref, b2_ref,
                   w1_ref, bm1_ref, w2_ref, bm2_ref,
                   o_ref,
                   qkv_ref, attn_ref,
                   *, num_heads, mlp_chunk):
    bt, n, d = x_ref.shape
    r = bt * n
    hd = d // num_heads
    scale = 1.0 / math.sqrt(hd)

    # Flatten the batch tile so every GEMM sees Bt*N rows.
    x = x_ref[...].astype(jnp.float32).reshape(r, d)

    # ---- block 1: x + Wo(attn(norm1(x))) ----
    ln1 = _layernorm(x, g1_ref[...], b1_ref[...])
    # Fused QKV projection: a single lane-dense (R, D) @ (D, 3D) MXU pass.
    qkv_ref[...] = jnp.dot(
        ln1.astype(jnp.bfloat16), wqkv_ref[...],
        preferred_element_type=jnp.float32).astype(jnp.bfloat16)

    for h in range(num_heads):                     # static loop over heads
        lo = h * hd
        # Static-offset slices of the QKV VMEM scratch (cheap strided loads;
        # no lane concatenate, no dynamic activation slicing).
        qh = qkv_ref[:, lo:lo + hd].reshape(bt, n, hd)
        kh = qkv_ref[:, d + lo:d + lo + hd].reshape(bt, n, hd)
        vh = qkv_ref[:, 2 * d + lo:2 * d + lo + hd].reshape(bt, n, hd)

        s = jnp.einsum("bqd,bkd->bqk", qh, kh,
                       preferred_element_type=jnp.float32) * scale
        s = s - jnp.max(s, axis=-1, keepdims=True)
        e = jnp.exp(s)
        probs = e * pl.reciprocal(jnp.sum(e, axis=-1, keepdims=True),
                                  approx=True)
        oh = jnp.einsum("bqk,bkd->bqd", probs.astype(jnp.bfloat16), vh,
                        preferred_element_type=jnp.float32)
        # Park this head's output at its static lane offset; the output
        # projection happens once, at full contraction depth, after the loop.
        attn_ref[:, lo:lo + hd] = oh.reshape(r, hd).astype(jnp.bfloat16)

    # One full-depth (R, D) @ (D, D) Wo GEMM (instead of num_heads K=hd dots).
    attn = jnp.dot(attn_ref[...], wo_ref[...],
                   preferred_element_type=jnp.float32)
    x1 = x + attn                                  # dropout1 = identity (eval)

    # ---- block 2: x1 + mlp(norm2(x1)) ----
    ln2 = _layernorm(x1, g2_ref[...], b2_ref[...]).astype(jnp.bfloat16)
    hdim = w1_ref.shape[1]
    if mlp_chunk >= hdim:
        hmid = _gelu_exact(
            jnp.dot(ln2, w1_ref[...], preferred_element_type=jnp.float32)
            + bm1_ref[...])
        mlp = jnp.dot(hmid.astype(jnp.bfloat16), w2_ref[...],
                      preferred_element_type=jnp.float32)
    else:
        mlp = jnp.zeros((r, d), jnp.float32)
        for c0 in range(0, hdim, mlp_chunk):       # static chunking (v7x only)
            hmid = _gelu_exact(
                jnp.dot(ln2, w1_ref[:, c0:c0 + mlp_chunk],
                        preferred_element_type=jnp.float32)
                + bm1_ref[:, c0:c0 + mlp_chunk])
            mlp = mlp + jnp.dot(hmid.astype(jnp.bfloat16),
                                w2_ref[c0:c0 + mlp_chunk, :],
                                preferred_element_type=jnp.float32)
    mlp = mlp + bm2_ref[...]

    o_ref[...] = (x1 + mlp).reshape(bt, n, d).astype(o_ref.dtype)


def prepare_params(params):
    """One-time parameter prep (do NOT redo per call): fuse Wq/Wk/Wv into a
    (D, 3D) weight and pre-cast all MXU weight operands to bf16."""
    bf16 = jnp.bfloat16
    return {
        "g1": params["g1"], "b1": params["b1"],
        "wqkv": jnp.concatenate(
            [params["wq"], params["wk"], params["wv"]], axis=1).astype(bf16),
        "wo": params["wo"].astype(bf16),
        "g2": params["g2"], "b2": params["b2"],
        "w1": params["w1"].astype(bf16),
        "bm1": params["bm1"],
        "w2": params["w2"].astype(bf16),
        "bm2": params["bm2"],
    }


def _vmem_budget_bytes():
    """Generation-aware VMEM limit: ~48 MiB on 64 MiB parts (v7x-class / when
    detection fails), ~96 MiB on 128 MiB parts (v5e / v6e)."""
    try:
        cap = pltpu.get_tpu_info().vmem_capacity_bytes
    except Exception:  # hardware query only; never masks kernel build errors
        cap = None
    if cap is None or cap <= 80 * 1024 * 1024:
        return 48 * 1024 * 1024
    return 96 * 1024 * 1024


def _pick_bt(B, N, row_cap, score_cap_bytes):
    """Pack batch elements per grid step, but keep the grid >= 2 steps (v7x
    has 2 TensorCores) and bound the per-head (bt, N, N) f32 score tile."""
    best = 1
    for cand in range(1, B + 1):
        if B % cand:
            continue
        if B >= 2 and (B // cand) < 2:
            continue
        if cand > 1 and cand * N > max(N, row_cap):
            continue
        if cand > 1 and cand * N * N * 4 > score_cap_bytes:
            continue
        best = cand
    return best


@functools.lru_cache(maxsize=None)
def _single_buffer_ok():
    """Explicit feature probe: does this jax/Mosaic accept and lower
    BlockSpec(pipeline_mode=pl.Buffered(1))?  Run once on a tiny kernel so the
    real kernel build needs no broad try/except."""
    if not hasattr(pl, "Buffered"):
        return False
    try:
        w = jnp.zeros((8, 128), jnp.float32)

        def probe(w_ref, o_ref):
            o_ref[...] = w_ref[...] + 1.0

        out = pl.pallas_call(
            probe,
            out_shape=jax.ShapeDtypeStruct((8, 128), jnp.float32),
            grid=(2,),
            in_specs=[pl.BlockSpec((8, 128), lambda i: (0, 0),
                                   pipeline_mode=pl.Buffered(1))],
            out_specs=pl.BlockSpec((8, 128), lambda i: (0, 0)),
        )(w)
        jax.block_until_ready(out)
        return True
    except Exception:
        return False


def transformer_encoder(x, prep, num_heads):
    """x: (B, N, D) f32; prep: output of prepare_params (bf16, fused QKV)."""
    B, N, D = x.shape
    H = prep["w1"].shape[1]

    budget = _vmem_budget_bytes()
    row_cap = 512 if budget < 64 * 1024 * 1024 else 1024
    bt = _pick_bt(B, N, row_cap, budget // 8)
    r = bt * N

    # MLP hidden-dim chunking only when the VMEM budget is tight (v7x-class);
    # on 128 MiB parts the (R, H) f32 intermediate is cheap -> no chunking.
    mlp_chunk = H
    if budget < 96 * 1024 * 1024 and H > 2048:
        for c in (2048, 1024, 512):
            if H % c == 0:
                mlp_chunk = c
                break

    # Constant (grid-invariant) weight/bias blocks: single-buffer if supported.
    const_kwargs = {}
    if _single_buffer_ok():
        const_kwargs["pipeline_mode"] = pl.Buffered(1)

    def const_spec(shape):
        nd = len(shape)
        return pl.BlockSpec(shape, lambda b, _nd=nd: (0,) * _nd, **const_kwargs)

    in_specs = [
        pl.BlockSpec((bt, N, D), lambda b: (b, 0, 0)),      # x: batch tile
        const_spec((1, D)), const_spec((1, D)),             # norm1 gamma/beta
        const_spec((D, 3 * D)),                             # fused Wqkv
        const_spec((D, D)),                                  # Wo
        const_spec((1, D)), const_spec((1, D)),             # norm2 gamma/beta
        const_spec((D, H)), const_spec((1, H)),             # mlp fc1 W, b
        const_spec((H, D)), const_spec((1, D)),             # mlp fc2 W, b
    ]

    kernel = functools.partial(encoder_kernel,
                               num_heads=num_heads, mlp_chunk=mlp_chunk)

    return pl.pallas_call(
        kernel,
        out_shape=jax.ShapeDtypeStruct((B, N, D), x.dtype),
        grid_spec=pltpu.PrefetchScalarGridSpec(
            num_scalar_prefetch=0,
            grid=(B // bt,),
            in_specs=in_specs,
            out_specs=pl.BlockSpec((bt, N, D), lambda b: (b, 0, 0)),
            scratch_shapes=[
                pltpu.VMEM((r, 3 * D), jnp.bfloat16),   # fused QKV activations
                pltpu.VMEM((r, D), jnp.bfloat16),       # per-head attn outputs
            ]),
        compiler_params=pltpu.CompilerParams(
            dimension_semantics=("parallel",),
            vmem_limit_bytes=budget,
        ),
    )(x,
      prep["g1"], prep["b1"],
      prep["wqkv"], prep["wo"],
      prep["g2"], prep["b2"],
      prep["w1"], prep["bm1"], prep["w2"], prep["bm2"])


def reference(x, p, num_heads):
    # pure-JAX f32 reference of the PyTorch forward (eval mode)
    B, N, D = x.shape
    hd = D // num_heads

    def ln(x, g, b):
        m = jnp.mean(x, axis=-1, keepdims=True)
        v = jnp.mean((x - m) ** 2, axis=-1, keepdims=True)
        return (x - m) / jnp.sqrt(v + EPS) * g + b

    ln1 = ln(x, p["g1"], p["b1"])
    q = (ln1 @ p["wq"]).reshape(B, N, num_heads, hd).transpose(0, 2, 1, 3)
    k = (ln1 @ p["wk"]).reshape(B, N, num_heads, hd).transpose(0, 2, 1, 3)
    v = (ln1 @ p["wv"]).reshape(B, N, num_heads, hd).transpose(0, 2, 1, 3)
    s = jnp.einsum("bhnd,bhmd->bhnm", q, k) / math.sqrt(hd)
    pr = jax.nn.softmax(s, axis=-1)
    a = jnp.einsum("bhnm,bhmd->bhnd", pr, v).transpose(0, 2, 1, 3).reshape(B, N, D)
    x1 = x + a @ p["wo"]
    ln2 = ln(x1, p["g2"], p["b2"])
    h = jax.nn.gelu(ln2 @ p["w1"] + p["bm1"], approximate=False)
    return x1 + h @ p["w2"] + p["bm2"]


if __name__ == "__main__":
    B, N, D = 2, 8, 32
    num_heads = 4
    mlp_ratio = 4.0
    H = int(D * mlp_ratio)

    key = jax.random.PRNGKey(0)
    ks = jax.random.split(key, 9)
    f32 = jnp.float32

    params = {
        "g1": jnp.ones((1, D), f32),
        "b1": jnp.zeros((1, D), f32),
        "wq": 0.02 * jax.random.normal(ks[0], (D, D), f32),
        "wk": 0.02 * jax.random.normal(ks[1], (D, D), f32),
        "wv": 0.02 * jax.random.normal(ks[2], (D, D), f32),
        "wo": 0.02 * jax.random.normal(ks[3], (D, D), f32),
        "g2": jnp.ones((1, D), f32),
        "b2": jnp.zeros((1, D), f32),
        "w1": 0.02 * jax.random.normal(ks[4], (D, H), f32),
        "bm1": 0.02 * jax.random.normal(ks[5], (1, H), f32),
        "w2": 0.02 * jax.random.normal(ks[6], (H, D), f32),
        "bm2": 0.02 * jax.random.normal(ks[7], (1, D), f32),
    }

    x = jax.random.normal(ks[8], (B, N, D), f32)

    prep = prepare_params(params)            # one-time bf16 cast + QKV fusion
    out = transformer_encoder(x, prep, num_heads)
    out = jax.block_until_ready(out)

    ref = reference(x, params, num_heads)
    assert out.shape == (B, N, D)
    # bf16 MXU operands + approx reciprocal in softmax -> looser tolerance vs f32 ref.
    assert jnp.allclose(out, ref, rtol=2e-2, atol=2e-2), "mismatch vs reference"

    print("KERNEL_OK")
</pallas_src>

<mosaic_0001>
module attributes {stable_mosaic.version = 11 : i64} {
  func.func @probe(%arg0: i32, %arg1: memref<8x128xf32, #tpu.memory_space<vmem>>, %arg2: memref<8x128xf32, #tpu.memory_space<vmem>>) attributes {dimension_semantics = [#tpu.dimension_semantics<arbitrary>], iteration_bounds = array<i64: 2>, scalar_prefetch = 0 : i64, scratch_operands = 0 : i64, tpu.core_type = #tpu.core_type<tc>, window_params = [{pipeline_mode = #tpu.pipeline_mode<synchronous>, transform_indices = @transform_0, window_bounds = array<i64: 8, 128>}, {pipeline_mode = #tpu.pipeline_mode<synchronous>, transform_indices = @transform_1, window_bounds = array<i64: 8, 128>}]} {
    %c0 = arith.constant 0 : index
    %c0_0 = arith.constant 0 : index
    %0 = vector.load %arg1[%c0, %c0_0] : memref<8x128xf32, #tpu.memory_space<vmem>>, vector<8x128xf32>
    %cst = arith.constant 1.000000e+00 : f32
    %1 = vector.broadcast %cst : f32 to vector<8x128xf32>
    %2 = arith.addf %0, %1 : vector<8x128xf32>
    %c0_1 = arith.constant 0 : index
    %c0_2 = arith.constant 0 : index
    %3 = vector.load %arg2[%c0_1, %c0_2] : memref<8x128xf32, #tpu.memory_space<vmem>>, vector<8x128xf32>
    tpu.vector_store %arg2[%c0_1, %c0_2], %2 {strides = array<i32>} : memref<8x128xf32, #tpu.memory_space<vmem>>, vector<8x128xf32>,
    return
  }
  func.func @transform_0(%arg0: i32) -> (i32, i32) {
    %c0_i32 = arith.constant 0 : i32
    %c0_i32_0 = arith.constant 0 : i32
    %c0_i32_1 = arith.constant 0 : i32
    return %c0_i32, %c0_i32_0 : i32, i32
  }
  func.func @transform_1(%arg0: i32) -> (i32, i32) {
    %c0_i32 = arith.constant 0 : i32
    %c0_i32_0 = arith.constant 0 : i32
    %c0_i32_1 = arith.constant 0 : i32
    return %c0_i32, %c0_i32_0 : i32, i32
  }
}

module attributes {stable_mosaic.version = 11 : i64} {
  func.func @encoder_kernel(%arg0: i32, %arg1: memref<1x8x32xf32, #tpu.memory_space<vmem>>, %arg2: memref<1x32xf32, #tpu.memory_space<vmem>>, %arg3: memref<1x32xf32, #tpu.memory_space<vmem>>, %arg4: memref<32x96xbf16, #tpu.memory_space<vmem>>, %arg5: memref<32x32xbf16, #tpu.memory_space<vmem>>, %arg6: memref<1x32xf32, #tpu.memory_space<vmem>>, %arg7: memref<1x32xf32, #tpu.memory_space<vmem>>, %arg8: memref<32x128xbf16, #tpu.memory_space<vmem>>, %arg9: memref<1x128xf32, #tpu.memory_space<vmem>>, %arg10: memref<128x32xbf16, #tpu.memory_space<vmem>>, %arg11: memref<1x32xf32, #tpu.memory_space<vmem>>, %arg12: memref<1x8x32xf32, #tpu.memory_space<vmem>>, %arg13: memref<8x96xbf16, #tpu.memory_space<vmem>>, %arg14: memref<8x32xbf16, #tpu.memory_space<vmem>>) attributes {dimension_semantics = [#tpu.dimension_semantics<parallel>], iteration_bounds = array<i64: 2>, scalar_prefetch = 0 : i64, scratch_operands = 2 : i64, tpu.core_type = #tpu.core_type<tc>, window_params = [{transform_indices = @transform_0, window_bounds = array<i64: 1, 8, 32>}, {pipeline_mode = #tpu.pipeline_mode<synchronous>, transform_indices = @transform_1, window_bounds = array<i64: 1, 32>}, {pipeline_mode = #tpu.pipeline_mode<synchronous>, transform_indices = @transform_2, window_bounds = array<i64: 1, 32>}, {pipeline_mode = #tpu.pipeline_mode<synchronous>, transform_indices = @transform_3, window_bounds = array<i64: 32, 96>}, {pipeline_mode = #tpu.pipeline_mode<synchronous>, transform_indices = @transform_4, window_bounds = array<i64: 32, 32>}, {pipeline_mode = #tpu.pipeline_mode<synchronous>, transform_indices = @transform_5, window_bounds = array<i64: 1, 32>}, {pipeline_mode = #tpu.pipeline_mode<synchronous>, transform_indices = @transform_6, window_bounds = array<i64: 1, 32>}, {pipeline_mode = #tpu.pipeline_mode<synchronous>, transform_indices = @transform_7, window_bounds = array<i64: 32, 128>}, {pipeline_mode = #tpu.pipeline_mode<synchronous>, transform_indices = @transform_8, window_bounds = array<i64: 1, 128>}, {pipeline_mode = #tpu.pipeline_mode<synchronous>, transform_indices = @transform_9, window_bounds = array<i64: 128, 32>}, {pipeline_mode = #tpu.pipeline_mode<synchronous>, transform_indices = @transform_10, window_bounds = array<i64: 1, 32>}, {transform_indices = @transform_11, window_bounds = array<i64: 1, 8, 32>}]} {
    %c0 = arith.constant 0 : index
    %c0_0 = arith.constant 0 : index
    %c0_1 = arith.constant 0 : index
    %0 = vector.load %arg1[%c0, %c0_0, %c0_1] : memref<1x8x32xf32, #tpu.memory_space<vmem>>, vector<1x8x32xf32>
    %1 = vector.shape_cast %0 : vector<1x8x32xf32> to vector<8x32xf32>
    %c0_2 = arith.constant 0 : index
    %c0_3 = arith.constant 0 : index
    %2 = vector.load %arg2[%c0_2, %c0_3] : memref<1x32xf32, #tpu.memory_space<vmem>>, vector<1x32xf32>
    %c0_4 = arith.constant 0 : index
    %c0_5 = arith.constant 0 : index
    %3 = vector.load %arg3[%c0_4, %c0_5] : memref<1x32xf32, #tpu.memory_space<vmem>>, vector<1x32xf32>
    %cst = arith.constant dense<0.000000e+00> : vector<8xf32>
    %4 = vector.multi_reduction <add>, %1, %cst [1] : vector<8x32xf32> to vector<8xf32>
    %5 = vector.shape_cast %4 : vector<8xf32> to vector<8x1xf32>
    %cst_6 = arith.constant 3.200000e+01 : f32
    %6 = vector.broadcast %cst_6 : f32 to vector<8x1xf32>
    %7 = arith.divf %5, %6 : vector<8x1xf32>
    %8 = vector.broadcast %7 : vector<8x1xf32> to vector<8x32xf32>
    %9 = arith.subf %1, %8 : vector<8x32xf32>
    %10 = arith.mulf %9, %9 : vector<8x32xf32>
    %cst_7 = arith.constant dense<0.000000e+00> : vector<8xf32>
    %11 = vector.multi_reduction <add>, %10, %cst_7 [1] : vector<8x32xf32> to vector<8xf32>
    %12 = vector.shape_cast %11 : vector<8xf32> to vector<8x1xf32>
    %cst_8 = arith.constant 3.200000e+01 : f32
    %13 = vector.broadcast %cst_8 : f32 to vector<8x1xf32>
    %14 = arith.divf %12, %13 : vector<8x1xf32>
    %15 = vector.broadcast %7 : vector<8x1xf32> to vector<8x32xf32>
    %16 = arith.subf %1, %15 : vector<8x32xf32>
    %cst_9 = arith.constant 9.99999974E-6 : f32
    %17 = vector.broadcast %cst_9 : f32 to vector<8x1xf32>
    %18 = arith.addf %14, %17 : vector<8x1xf32>
    %19 = math.rsqrt %18 : vector<8x1xf32>
    %20 = vector.broadcast %19 : vector<8x1xf32> to vector<8x32xf32>
    %21 = arith.mulf %16, %20 : vector<8x32xf32>
    %22 = vector.broadcast %2 : vector<1x32xf32> to vector<8x32xf32>
    %23 = arith.mulf %21, %22 : vector<8x32xf32>
    %24 = vector.broadcast %3 : vector<1x32xf32> to vector<8x32xf32>
    %25 = arith.addf %23, %24 : vector<8x32xf32>
    %26 = arith.truncf %25 : vector<8x32xf32> to vector<8x32xbf16>
    %c0_10 = arith.constant 0 : index
    %c0_11 = arith.constant 0 : index
    %27 = vector.load %arg4[%c0_10, %c0_11] : memref<32x96xbf16, #tpu.memory_space<vmem>>, vector<32x96xbf16>
    %cst_12 = arith.constant dense<0.000000e+00> : vector<8x96xf32>
    %28 = tpu.matmul %26, %27, %cst_12 {dimension_numbers = #tpu.dot_dimension_numbers<[1], [0], [0], [1], [0, 0, 1, 1], [], []>} : vector<8x32xbf16>, vector<32x96xbf16>, vector<8x96xf32> -> vector<8x96xf32>
    %29 = arith.truncf %28 : vector<8x96xf32> to vector<8x96xbf16>
    %c0_13 = arith.constant 0 : index
    %c0_14 = arith.constant 0 : index
    %30 = vector.load %arg13[%c0_13, %c0_14] : memref<8x96xbf16, #tpu.memory_space<vmem>>, vector<8x96xbf16>
    tpu.vector_store %arg13[%c0_13, %c0_14], %29 {strides = array<i32>} : memref<8x96xbf16, #tpu.memory_space<vmem>>, vector<8x96xbf16>,
    %c0_15 = arith.constant 0 : index
    %c0_16 = arith.constant 0 : index
    %31 = vector.load %arg13[%c0_15, %c0_16] : memref<8x96xbf16, #tpu.memory_space<vmem>>, vector<8x8xbf16>
    %32 = vector.shape_cast %31 : vector<8x8xbf16> to vector<1x8x8xbf16>
    %c0_17 = arith.constant 0 : index
    %c32 = arith.constant 32 : index
    %33 = vector.load %arg13[%c0_17, %c32] : memref<8x96xbf16, #tpu.memory_space<vmem>>, vector<8x8xbf16>
    %34 = vector.shape_cast %33 : vector<8x8xbf16> to vector<1x8x8xbf16>
    %c0_18 = arith.constant 0 : index
    %c64 = arith.constant 64 : index
    %35 = vector.load %arg13[%c0_18, %c64] : memref<8x96xbf16, #tpu.memory_space<vmem>>, vector<8x8xbf16>
    %36 = vector.shape_cast %35 : vector<8x8xbf16> to vector<1x8x8xbf16>
    "tpu.trace_start"() <{level = 10 : i32, message = "bqd,bkd->bqk"}> : () -> ()
    %cst_19 = arith.constant dense<0.000000e+00> : vector<1x8x8xf32>
    %37 = tpu.matmul %32, %34, %cst_19 {dimension_numbers = #tpu.dot_dimension_numbers<[2], [2], [1], [1], [0, 0, 0, 1, 1, 1], [0], [0]>} : vector<1x8x8xbf16>, vector<1x8x8xbf16>, vector<1x8x8xf32> -> vector<1x8x8xf32>
    "tpu.trace_stop"() : () -> ()
    %cst_20 = arith.constant 0.353553385 : f32
    %38 = vector.broadcast %cst_20 : f32 to vector<1x8x8xf32>
    %39 = arith.mulf %37, %38 : vector<1x8x8xf32>
    %cst_21 = arith.constant dense<0xFF800000> : vector<1x8xf32>
    %40 = vector.multi_reduction <maximumf>, %39, %cst_21 [2] : vector<1x8x8xf32> to vector<1x8xf32>
    %41 = vector.shape_cast %40 : vector<1x8xf32> to vector<1x8x1xf32>
    %42 = vector.broadcast %41 : vector<1x8x1xf32> to vector<1x8x8xf32>
    %43 = arith.subf %39, %42 : vector<1x8x8xf32>
    %44 = math.exp %43 : vector<1x8x8xf32>
    %cst_22 = arith.constant dense<0.000000e+00> : vector<1x8xf32>
    %45 = vector.multi_reduction <add>, %44, %cst_22 [2] : vector<1x8x8xf32> to vector<1x8xf32>
    %46 = vector.shape_cast %45 : vector<1x8xf32> to vector<1x8x1xf32>
    %47 = tpu.reciprocal %46 {approx = true} : vector<1x8x1xf32> -> vector<1x8x1xf32>
    %48 = vector.broadcast %47 : vector<1x8x1xf32> to vector<1x8x8xf32>
    %49 = arith.mulf %44, %48 : vector<1x8x8xf32>
    %50 = arith.truncf %49 : vector<1x8x8xf32> to vector<1x8x8xbf16>
    "tpu.trace_start"() <{level = 10 : i32, message = "bqk,bkd->bqd"}> : () -> ()
    %cst_23 = arith.constant dense<0.000000e+00> : vector<1x8x8xf32>
    %51 = tpu.matmul %50, %36, %cst_23 {dimension_numbers = #tpu.dot_dimension_numbers<[2], [1], [1], [2], [0, 0, 0, 1, 1, 2], [0], [0]>} : vector<1x8x8xbf16>, vector<1x8x8xbf16>, vector<1x8x8xf32> -> vector<1x8x8xf32>
    "tpu.trace_stop"() : () -> ()
    %52 = vector.shape_cast %51 : vector<1x8x8xf32> to vector<8x8xf32>
    %53 = arith.truncf %52 : vector<8x8xf32> to vector<8x8xbf16>
    %c0_24 = arith.constant 0 : index
    %c0_25 = arith.constant 0 : index
    %54 = vector.load %arg14[%c0_24, %c0_25] : memref<8x32xbf16, #tpu.memory_space<vmem>>, vector<8x8xbf16>
    tpu.vector_store %arg14[%c0_24, %c0_25], %53 {strides = array<i32>} : memref<8x32xbf16, #tpu.memory_space<vmem>>, vector<8x8xbf16>,
    %c0_26 = arith.constant 0 : index
    %c8 = arith.constant 8 : index
    %55 = vector.load %arg13[%c0_26, %c8] : memref<8x96xbf16, #tpu.memory_space<vmem>>, vector<8x8xbf16>
    %56 = vector.shape_cast %55 : vector<8x8xbf16> to vector<1x8x8xbf16>
    %c0_27 = arith.constant 0 : index
    %c40 = arith.constant 40 : index
    %57 = vector.load %arg13[%c0_27, %c40] : memref<8x96xbf16, #tpu.memory_space<vmem>>, vector<8x8xbf16>
    %58 = vector.shape_cast %57 : vector<8x8xbf16> to vector<1x8x8xbf16>
    %c0_28 = arith.constant 0 : index
    %c72 = arith.constant 72 : index
    %59 = vector.load %arg13[%c0_28, %c72] : memref<8x96xbf16, #tpu.memory_space<vmem>>, vector<8x8xbf16>
    %60 = vector.shape_cast %59 : vector<8x8xbf16> to vector<1x8x8xbf16>
    "tpu.trace_start"() <{level = 10 : i32, message = "bqd,bkd->bqk"}> : () -> ()
    %cst_29 = arith.constant dense<0.000000e+00> : vector<1x8x8xf32>
    %61 = tpu.matmul %56, %58, %cst_29 {dimension_numbers = #tpu.dot_dimension_numbers<[2], [2], [1], [1], [0, 0, 0, 1, 1, 1], [0], [0]>} : vector<1x8x8xbf16>, vector<1x8x8xbf16>, vector<1x8x8xf32> -> vector<1x8x8xf32>
    "tpu.trace_stop"() : () -> ()
    %cst_30 = arith.constant 0.353553385 : f32
    %62 = vector.broadcast %cst_30 : f32 to vector<1x8x8xf32>
    %63 = arith.mulf %61, %62 : vector<1x8x8xf32>
    %cst_31 = arith.constant dense<0xFF800000> : vector<1x8xf32>
    %64 = vector.multi_reduction <maximumf>, %63, %cst_31 [2] : vector<1x8x8xf32> to vector<1x8xf32>
    %65 = vector.shape_cast %64 : vector<1x8xf32> to vector<1x8x1xf32>
    %66 = vector.broadcast %65 : vector<1x8x1xf32> to vector<1x8x8xf32>
    %67 = arith.subf %63, %66 : vector<1x8x8xf32>
    %68 = math.exp %67 : vector<1x8x8xf32>
    %cst_32 = arith.constant dense<0.000000e+00> : vector<1x8xf32>
    %69 = vector.multi_reduction <add>, %68, %cst_32 [2] : vector<1x8x8xf32> to vector<1x8xf32>
    %70 = vector.shape_cast %69 : vector<1x8xf32> to vector<1x8x1xf32>
    %71 = tpu.reciprocal %70 {approx = true} : vector<1x8x1xf32> -> vector<1x8x1xf32>
    %72 = vector.broadcast %71 : vector<1x8x1xf32> to vector<1x8x8xf32>
    %73 = arith.mulf %68, %72 : vector<1x8x8xf32>
    %74 = arith.truncf %73 : vector<1x8x8xf32> to vector<1x8x8xbf16>
    "tpu.trace_start"() <{level = 10 : i32, message = "bqk,bkd->bqd"}> : () -> ()
    %cst_33 = arith.constant dense<0.000000e+00> : vector<1x8x8xf32>
    %75 = tpu.matmul %74, %60, %cst_33 {dimension_numbers = #tpu.dot_dimension_numbers<[2], [1], [1], [2], [0, 0, 0, 1, 1, 2], [0], [0]>} : vector<1x8x8xbf16>, vector<1x8x8xbf16>, vector<1x8x8xf32> -> vector<1x8x8xf32>
    "tpu.trace_stop"() : () -> ()
    %76 = vector.shape_cast %75 : vector<1x8x8xf32> to vector<8x8xf32>
    %77 = arith.truncf %76 : vector<8x8xf32> to vector<8x8xbf16>
    %c0_34 = arith.constant 0 : index
    %c8_35 = arith.constant 8 : index
    %78 = vector.load %arg14[%c0_34, %c8_35] : memref<8x32xbf16, #tpu.memory_space<vmem>>, vector<8x8xbf16>
    tpu.vector_store %arg14[%c0_34, %c8_35], %77 {strides = array<i32>} : memref<8x32xbf16, #tpu.memory_space<vmem>>, vector<8x8xbf16>,
    %c0_36 = arith.constant 0 : index
    %c16 = arith.constant 16 : index
    %79 = vector.load %arg13[%c0_36, %c16] : memref<8x96xbf16, #tpu.memory_space<vmem>>, vector<8x8xbf16>
    %80 = vector.shape_cast %79 : vector<8x8xbf16> to vector<1x8x8xbf16>
    %c0_37 = arith.constant 0 : index
    %c48 = arith.constant 48 : index
    %81 = vector.load %arg13[%c0_37, %c48] : memref<8x96xbf16, #tpu.memory_space<vmem>>, vector<8x8xbf16>
    %82 = vector.shape_cast %81 : vector<8x8xbf16> to vector<1x8x8xbf16>
    %c0_38 = arith.constant 0 : index
    %c80 = arith.constant 80 : index
    %83 = vector.load %arg13[%c0_38, %c80] : memref<8x96xbf16, #tpu.memory_space<vmem>>, vector<8x8xbf16>
    %84 = vector.shape_cast %83 : vector<8x8xbf16> to vector<1x8x8xbf16>
    "tpu.trace_start"() <{level = 10 : i32, message = "bqd,bkd->bqk"}> : () -> ()
    %cst_39 = arith.constant dense<0.000000e+00> : vector<1x8x8xf32>
    %85 = tpu.matmul %80, %82, %cst_39 {dimension_numbers = #tpu.dot_dimension_numbers<[2], [2], [1], [1], [0, 0, 0, 1, 1, 1], [0], [0]>} : vector<1x8x8xbf16>, vector<1x8x8xbf16>, vector<1x8x8xf32> -> vector<1x8x8xf32>
    "tpu.trace_stop"() : () -> ()
    %cst_40 = arith.constant 0.353553385 : f32
    %86 = vector.broadcast %cst_40 : f32 to vector<1x8x8xf32>
    %87 = arith.mulf %85, %86 : vector<1x8x8xf32>
    %cst_41 = arith.constant dense<0xFF800000> : vector<1x8xf32>
    %88 = vector.multi_reduction <maximumf>, %87, %cst_41 [2] : vector<1x8x8xf32> to vector<1x8xf32>
    %89 = vector.shape_cast %88 : vector<1x8xf32> to vector<1x8x1xf32>
    %90 = vector.broadcast %89 : vector<1x8x1xf32> to vector<1x8x8xf32>
    %91 = arith.subf %87, %90 : vector<1x8x8xf32>
    %92 = math.exp %91 : vector<1x8x8xf32>
    %cst_42 = arith.constant dense<0.000000e+00> : vector<1x8xf32>
    %93 = vector.multi_reduction <add>, %92, %cst_42 [2] : vector<1x8x8xf32> to vector<1x8xf32>
    %94 = vector.shape_cast %93 : vector<1x8xf32> to vector<1x8x1xf32>
    %95 = tpu.reciprocal %94 {approx = true} : vector<1x8x1xf32> -> vector<1x8x1xf32>
    %96 = vector.broadcast %95 : vector<1x8x1xf32> to vector<1x8x8xf32>
    %97 = arith.mulf %92, %96 : vector<1x8x8xf32>
    %98 = arith.truncf %97 : vector<1x8x8xf32> to vector<1x8x8xbf16>
    "tpu.trace_start"() <{level = 10 : i32, message = "bqk,bkd->bqd"}> : () -> ()
    %cst_43 = arith.constant dense<0.000000e+00> : vector<1x8x8xf32>
    %99 = tpu.matmul %98, %84, %cst_43 {dimension_numbers = #tpu.dot_dimension_numbers<[2], [1], [1], [2], [0, 0, 0, 1, 1, 2], [0], [0]>} : vector<1x8x8xbf16>, vector<1x8x8xbf16>, vector<1x8x8xf32> -> vector<1x8x8xf32>
    "tpu.trace_stop"() : () -> ()
    %100 = vector.shape_cast %99 : vector<1x8x8xf32> to vector<8x8xf32>
    %101 = arith.truncf %100 : vector<8x8xf32> to vector<8x8xbf16>
    %c0_44 = arith.constant 0 : index
    %c16_45 = arith.constant 16 : index
    %102 = vector.load %arg14[%c0_44, %c16_45] : memref<8x32xbf16, #tpu.memory_space<vmem>>, vector<8x8xbf16>
    tpu.vector_store %arg14[%c0_44, %c16_45], %101 {strides = array<i32>} : memref<8x32xbf16, #tpu.memory_space<vmem>>, vector<8x8xbf16>,
    %c0_46 = arith.constant 0 : index
    %c24 = arith.constant 24 : index
    %103 = vector.load %arg13[%c0_46, %c24] : memref<8x96xbf16, #tpu.memory_space<vmem>>, vector<8x8xbf16>
    %104 = vector.shape_cast %103 : vector<8x8xbf16> to vector<1x8x8xbf16>
    %c0_47 = arith.constant 0 : index
    %c56 = arith.constant 56 : index
    %105 = vector.load %arg13[%c0_47, %c56] : memref<8x96xbf16, #tpu.memory_space<vmem>>, vector<8x8xbf16>
    %106 = vector.shape_cast %105 : vector<8x8xbf16> to vector<1x8x8xbf16>
    %c0_48 = arith.constant 0 : index
    %c88 = arith.constant 88 : index
    %107 = vector.load %arg13[%c0_48, %c88] : memref<8x96xbf16, #tpu.memory_space<vmem>>, vector<8x8xbf16>
    %108 = vector.shape_cast %107 : vector<8x8xbf16> to vector<1x8x8xbf16>
    "tpu.trace_start"() <{level = 10 : i32, message = "bqd,bkd->bqk"}> : () -> ()
    %cst_49 = arith.constant dense<0.000000e+00> : vector<1x8x8xf32>
    %109 = tpu.matmul %104, %106, %cst_49 {dimension_numbers = #tpu.dot_dimension_numbers<[2], [2], [1], [1], [0, 0, 0, 1, 1, 1], [0], [0]>} : vector<1x8x8xbf16>, vector<1x8x8xbf16>, vector<1x8x8xf32> -> vector<1x8x8xf32>
    "tpu.trace_stop"() : () -> ()
    %cst_50 = arith.constant 0.353553385 : f32
    %110 = vector.broadcast %cst_50 : f32 to vector<1x8x8xf32>
    %111 = arith.mulf %109, %110 : vector<1x8x8xf32>
    %cst_51 = arith.constant dense<0xFF800000> : vector<1x8xf32>
    %112 = vector.multi_reduction <maximumf>, %111, %cst_51 [2] : vector<1x8x8xf32> to vector<1x8xf32>
    %113 = vector.shape_cast %112 : vector<1x8xf32> to vector<1x8x1xf32>
    %114 = vector.broadcast %113 : vector<1x8x1xf32> to vector<1x8x8xf32>
    %115 = arith.subf %111, %114 : vector<1x8x8xf32>
    %116 = math.exp %115 : vector<1x8x8xf32>
    %cst_52 = arith.constant dense<0.000000e+00> : vector<1x8xf32>
    %117 = vector.multi_reduction <add>, %116, %cst_52 [2] : vector<1x8x8xf32> to vector<1x8xf32>
    %118 = vector.shape_cast %117 : vector<1x8xf32> to vector<1x8x1xf32>
    %119 = tpu.reciprocal %118 {approx = true} : vector<1x8x1xf32> -> vector<1x8x1xf32>
    %120 = vector.broadcast %119 : vector<1x8x1xf32> to vector<1x8x8xf32>
    %121 = arith.mulf %116, %120 : vector<1x8x8xf32>
    %122 = arith.truncf %121 : vector<1x8x8xf32> to vector<1x8x8xbf16>
    "tpu.trace_start"() <{level = 10 : i32, message = "bqk,bkd->bqd"}> : () -> ()
    %cst_53 = arith.constant dense<0.000000e+00> : vector<1x8x8xf32>
    %123 = tpu.matmul %122, %108, %cst_53 {dimension_numbers = #tpu.dot_dimension_numbers<[2], [1], [1], [2], [0, 0, 0, 1, 1, 2], [0], [0]>} : vector<1x8x8xbf16>, vector<1x8x8xbf16>, vector<1x8x8xf32> -> vector<1x8x8xf32>
    "tpu.trace_stop"() : () -> ()
    %124 = vector.shape_cast %123 : vector<1x8x8xf32> to vector<8x8xf32>
    %125 = arith.truncf %124 : vector<8x8xf32> to vector<8x8xbf16>
    %c0_54 = arith.constant 0 : index
    %c24_55 = arith.constant 24 : index
    %126 = vector.load %arg14[%c0_54, %c24_55] : memref<8x32xbf16, #tpu.memory_space<vmem>>, vector<8x8xbf16>
    tpu.vector_store %arg14[%c0_54, %c24_55], %125 {strides = array<i32>} : memref<8x32xbf16, #tpu.memory_space<vmem>>, vector<8x8xbf16>,
    %c0_56 = arith.constant 0 : index
    %c0_57 = arith.constant 0 : index
    %127 = vector.load %arg14[%c0_56, %c0_57] : memref<8x32xbf16, #tpu.memory_space<vmem>>, vector<8x32xbf16>
    %c0_58 = arith.constant 0 : index
    %c0_59 = arith.constant 0 : index
    %128 = vector.load %arg5[%c0_58, %c0_59] : memref<32x32xbf16, #tpu.memory_space<vmem>>, vector<32x32xbf16>
    %cst_60 = arith.constant dense<0.000000e+00> : vector<8x32xf32>
    %129 = tpu.matmul %127, %128, %cst_60 {dimension_numbers = #tpu.dot_dimension_numbers<[1], [0], [0], [1], [0, 0, 1, 1], [], []>} : vector<8x32xbf16>, vector<32x32xbf16>, vector<8x32xf32> -> vector<8x32xf32>
    %130 = arith.addf %1, %129 : vector<8x32xf32>
    %c0_61 = arith.constant 0 : index
    %c0_62 = arith.constant 0 : index
    %131 = vector.load %arg6[%c0_61, %c0_62] : memref<1x32xf32, #tpu.memory_space<vmem>>, vector<1x32xf32>
    %c0_63 = arith.constant 0 : index
    %c0_64 = arith.constant 0 : index
    %132 = vector.load %arg7[%c0_63, %c0_64] : memref<1x32xf32, #tpu.memory_space<vmem>>, vector<1x32xf32>
    %cst_65 = arith.constant dense<0.000000e+00> : vector<8xf32>
    %133 = vector.multi_reduction <add>, %130, %cst_65 [1] : vector<8x32xf32> to vector<8xf32>
    %134 = vector.shape_cast %133 : vector<8xf32> to vector<8x1xf32>
    %cst_66 = arith.constant 3.200000e+01 : f32
    %135 = vector.broadcast %cst_66 : f32 to vector<8x1xf32>
    %136 = arith.divf %134, %135 : vector<8x1xf32>
    %137 = vector.broadcast %136 : vector<8x1xf32> to vector<8x32xf32>
    %138 = arith.subf %130, %137 : vector<8x32xf32>
    %139 = arith.mulf %138, %138 : vector<8x32xf32>
    %cst_67 = arith.constant dense<0.000000e+00> : vector<8xf32>
    %140 = vector.multi_reduction <add>, %139, %cst_67 [1] : vector<8x32xf32> to vector<8xf32>
    %141 = vector.shape_cast %140 : vector<8xf32> to vector<8x1xf32>
    %cst_68 = arith.constant 3.200000e+01 : f32
    %142 = vector.broadcast %cst_68 : f32 to vector<8x1xf32>
    %143 = arith.divf %141, %142 : vector<8x1xf32>
    %144 = vector.broadcast %136 : vector<8x1xf32> to vector<8x32xf32>
    %145 = arith.subf %130, %144 : vector<8x32xf32>
    %cst_69 = arith.constant 9.99999974E-6 : f32
    %146 = vector.broadcast %cst_69 : f32 to vector<8x1xf32>
    %147 = arith.addf %143, %146 : vector<8x1xf32>
    %148 = math.rsqrt %147 : vector<8x1xf32>
    %149 = vector.broadcast %148 : vector<8x1xf32> to vector<8x32xf32>
    %150 = arith.mulf %145, %149 : vector<8x32xf32>
    %151 = vector.broadcast %131 : vector<1x32xf32> to vector<8x32xf32>
    %152 = arith.mulf %150, %151 : vector<8x32xf32>
    %153 = vector.broadcast %132 : vector<1x32xf32> to vector<8x32xf32>
    %154 = arith.addf %152, %153 : vector<8x32xf32>
    %155 = arith.truncf %154 : vector<8x32xf32> to vector<8x32xbf16>
    %c0_70 = arith.constant 0 : index
    %c0_71 = arith.constant 0 : index
    %156 = vector.load %arg8[%c0_70, %c0_71] : memref<32x128xbf16, #tpu.memory_space<vmem>>, vector<32x128xbf16>
    %cst_72 = arith.constant dense<0.000000e+00> : vector<8x128xf32>
    %157 = tpu.matmul %155, %156, %cst_72 {dimension_numbers = #tpu.dot_dimension_numbers<[1], [0], [0], [1], [0, 0, 1, 1], [], []>} : vector<8x32xbf16>, vector<32x128xbf16>, vector<8x128xf32> -> vector<8x128xf32>
    %c0_73 = arith.constant 0 : index
    %c0_74 = arith.constant 0 : index
    %158 = vector.load %arg9[%c0_73, %c0_74] : memref<1x128xf32, #tpu.memory_space<vmem>>, vector<1x128xf32>
    %159 = vector.broadcast %158 : vector<1x128xf32> to vector<8x128xf32>
    %160 = arith.addf %157, %159 : vector<8x128xf32>
    %cst_75 = arith.constant 5.000000e-01 : f32
    %161 = vector.broadcast %cst_75 : f32 to vector<8x128xf32>
    %162 = arith.mulf %161, %160 : vector<8x128xf32>
    %cst_76 = arith.constant 0.707106769 : f32
    %163 = vector.broadcast %cst_76 : f32 to vector<8x128xf32>
    %164 = arith.mulf %160, %163 : vector<8x128xf32>
    %165 = math.erf %164 : vector<8x128xf32>
    %cst_77 = arith.constant 1.000000e+00 : f32
    %166 = vector.broadcast %cst_77 : f32 to vector<8x128xf32>
    %167 = arith.addf %166, %165 : vector<8x128xf32>
    %168 = arith.mulf %162, %167 : vector<8x128xf32>
    %169 = arith.truncf %168 : vector<8x128xf32> to vector<8x128xbf16>
    %c0_78 = arith.constant 0 : index
    %c0_79 = arith.constant 0 : index
    %170 = vector.load %arg10[%c0_78, %c0_79] : memref<128x32xbf16, #tpu.memory_space<vmem>>, vector<128x32xbf16>
    %cst_80 = arith.constant dense<0.000000e+00> : vector<8x32xf32>
    %171 = tpu.matmul %169, %170, %cst_80 {dimension_numbers = #tpu.dot_dimension_numbers<[1], [0], [0], [1], [0, 0, 1, 1], [], []>} : vector<8x128xbf16>, vector<128x32xbf16>, vector<8x32xf32> -> vector<8x32xf32>
    %c0_81 = arith.constant 0 : index
    %c0_82 = arith.constant 0 : index
    %172 = vector.load %arg11[%c0_81, %c0_82] : memref<1x32xf32, #tpu.memory_space<vmem>>, vector<1x32xf32>
    %173 = vector.broadcast %172 : vector<1x32xf32> to vector<8x32xf32>
    %174 = arith.addf %171, %173 : vector<8x32xf32>
    %175 = arith.addf %130, %174 : vector<8x32xf32>
    %176 = vector.shape_cast %175 : vector<8x32xf32> to vector<1x8x32xf32>
    %c0_83 = arith.constant 0 : index
    %c0_84 = arith.constant 0 : index
    %c0_85 = arith.constant 0 : index
    %177 = vector.load %arg12[%c0_83, %c0_84, %c0_85] : memref<1x8x32xf32, #tpu.memory_space<vmem>>, vector<1x8x32xf32>
    tpu.vector_store %arg12[%c0_83, %c0_84, %c0_85], %176 {strides = array<i32>} : memref<1x8x32xf32, #tpu.memory_space<vmem>>, vector<1x8x32xf32>,
    return
  }
  func.func @transform_0(%arg0: i32) -> (i32, i32, i32) {
    %c0_i32 = arith.constant 0 : i32
    %c0_i32_0 = arith.constant 0 : i32
    %c0_i32_1 = arith.constant 0 : i32
    return %arg0, %c0_i32, %c0_i32_0 : i32, i32, i32
  }
  func.func @transform_1(%arg0: i32) -> (i32, i32) {
    %c0_i32 = arith.constant 0 : i32
    %c0_i32_0 = arith.constant 0 : i32
    %c0_i32_1 = arith.constant 0 : i32
    return %c0_i32, %c0_i32_0 : i32, i32
  }
  func.func @transform_2(%arg0: i32) -> (i32, i32) {
    %c0_i32 = arith.constant 0 : i32
    %c0_i32_0 = arith.constant 0 : i32
    %c0_i32_1 = arith.constant 0 : i32
    return %c0_i32, %c0_i32_0 : i32, i32
  }
  func.func @transform_3(%arg0: i32) -> (i32, i32) {
    %c0_i32 = arith.constant 0 : i32
    %c0_i32_0 = arith.constant 0 : i32
    %c0_i32_1 = arith.constant 0 : i32
    return %c0_i32, %c0_i32_0 : i32, i32
  }
  func.func @transform_4(%arg0: i32) -> (i32, i32) {
    %c0_i32 = arith.constant 0 : i32
    %c0_i32_0 = arith.constant 0 : i32
    %c0_i32_1 = arith.constant 0 : i32
    return %c0_i32, %c0_i32_0 : i32, i32
  }
  func.func @transform_5(%arg0: i32) -> (i32, i32) {
    %c0_i32 = arith.constant 0 : i32
    %c0_i32_0 = arith.constant 0 : i32
    %c0_i32_1 = arith.constant 0 : i32
    return %c0_i32, %c0_i32_0 : i32, i32
  }
  func.func @transform_6(%arg0: i32) -> (i32, i32) {
    %c0_i32 = arith.constant 0 : i32
    %c0_i32_0 = arith.constant 0 : i32
    %c0_i32_1 = arith.constant 0 : i32
    return %c0_i32, %c0_i32_0 : i32, i32
  }
  func.func @transform_7(%arg0: i32) -> (i32, i32) {
    %c0_i32 = arith.constant 0 : i32
    %c0_i32_0 = arith.constant 0 : i32
    %c0_i32_1 = arith.constant 0 : i32
    return %c0_i32, %c0_i32_0 : i32, i32
  }
  func.func @transform_8(%arg0: i32) -> (i32, i32) {
    %c0_i32 = arith.constant 0 : i32
    %c0_i32_0 = arith.constant 0 : i32
    %c0_i32_1 = arith.constant 0 : i32
    return %c0_i32, %c0_i32_0 : i32, i32
  }
  func.func @transform_9(%arg0: i32) -> (i32, i32) {
    %c0_i32 = arith.constant 0 : i32
    %c0_i32_0 = arith.constant 0 : i32
    %c0_i32_1 = arith.constant 0 : i32
    return %c0_i32, %c0_i32_0 : i32, i32
  }
  func.func @transform_10(%arg0: i32) -> (i32, i32) {
    %c0_i32 = arith.constant 0 : i32
    %c0_i32_0 = arith.constant 0 : i32
    %c0_i32_1 = arith.constant 0 : i32
    return %c0_i32, %c0_i32_0 : i32, i32
  }
  func.func @transform_11(%arg0: i32) -> (i32, i32, i32) {
    %c0_i32 = arith.constant 0 : i32
    %c0_i32_0 = arith.constant 0 : i32
    %c0_i32_1 = arith.constant 0 : i32
    return %arg0, %c0_i32, %c0_i32_0 : i32, i32, i32
  }
}

</mosaic_0001>

<bundles_post_ra>
// kernel: tpu_custom_call.1
= control target key start
LH: loop header
LB: loop body
LE: loop exit
PB: predicated region body
PF: predicated region fallthrough
CT: control target
= control target key end

     0   :  { %6 = vsyncpa [#allocation3], 0  ;;  %s341_s0 = inlined_call_operand.hbm [shape: f32[8,128], index: 0, kind: input, shape index: {}]   ;;  %s342_s1 = inlined_call_operand.hbm [shape: f32[8,128], index: 1, kind: output, shape index: {}]  }
   0x1   :  { %7 = vsyncpa [#allocation4], 0  ;;  %s262_s6 = smov 0  }
   0x2 LB: > { %s145_s7 = sadd.s32 4294967295, %s248_s6   ;;  %p146_p0 = scmp.ge.s32.totalorder %s248_s6, 1  ;;  %s248_s6 = sphi %s262_s6, %s13_s6  }
   0x3   : > { %p60_p1 = scmp.lt.s32.totalorder %s248_s6, 3  ;;  %p276_p3 = scmp.eq.s32.totalorder %s145_s7, 0 }
   0x4   : > { %s250_s10 = smov [#allocation2]   ;;  %s180_s15 = scalar_lea.hbm %s341_s0, 128 }
   0x5   : > { %p270_p2 = pnand %p146_p0, %p60_p1  ;;  %s73_s11 = sshll.u32 %s250_s10, 4  ;;  %s74_s11 = int_to_ptr.vmem [resolvable:$true] %s73_s11 }
   0x6   : > { %s347_s9 = scalar_select %p276_p3, 1, 0 }
   0x7   : > { %s346_s8 = scalar_select %p270_p2, 1, 0 }
   0x8   : > { %p162_p4 = pneg %p270_p2  ;;  %p181_p6 = scmp.ne.s32.totalorder %s341_s0, %s180_s15 }
   0x9   : > { %p187_p10 = scmp.lt.u32.totalorder %s180_s15, %s341_s0 }
   0xa   : > { %p284_p5 = pnand %p276_p3, %p162_p4 }
   0xc   : > { %p182_p7 = pneg %p284_p5 }
   0xe   : > { %p183_p8 = pnand %p182_p7, %p181_p6 }
  0x10   : > { %p184_p9 = pneg %p183_p8 }
  0x12   : > { %p189_p11 = pnand %p187_p10, %p184_p9 }
  0x14   : > { %192 = shalt.err (!%p189_p11)
}
  0x15   : > { %s193_s20 = scalar_lea.vmem %s74_s11, 128  ;;  %p201_p1 = scmp.lt.s32.totalorder %s74_s11, %s74_s11 }
  0x16   : > { %p194_p12 = scmp.ne.s32.totalorder %s74_s11, %s193_s20  ;;  %p202_p4 = scmp.lt.s32.totalorder %s193_s20, %s193_s20 }
  0x18   : > { %p196_p13 = pnand %p194_p12, %p182_p7  ;;  %p203_p3 = por %p202_p4, %p201_p1 }
  0x1a   : > { %p197_p0 = pneg %p196_p13 }
  0x1c   : > { %p204_p2 = pnand %p203_p3, %p197_p0 }
  0x1e   : > { %207 = shalt.err (!%p204_p2)
}
  0x1f   : > { %165 = dma.hbm_to_vmem [thread:$0]  (!%p284_p5), %s341_s0, 128, %s74_s11, [#allocation3]  }
  0x20   : > { %p349_p6 = scmp.ne.s32.totalorder %s346_s8, 0 }
  0x21   : > { %p350_p8 = scmp.ne.s32.totalorder (!%p349_p6), %s347_s9, 0 }
  0x22   : > { %86 = sbr.rel (%p349_p6) target bundleno = 67 (0x43), region = 24 }
  0x29   : > { %239 = dma.done.wait (%p350_p8), [#allocation3], 128  }
  0x2a   : > { %241 = vsyncadd (%p350_p8), [#allocation3], 4294967168  ;;  %s251_s23 = smov [#allocation5]   ;;  %v96_v0 = vld [vmem:[#allocation2] sm:$0xff]  ;;  %p312_p2 = scmp.eq.s32.totalorder %s145_s7, 1 }
  0x2b   : > { %s106_s24 = sshll.u32 %s251_s23, 4  ;;  %v97_v1 = vadd.f32 1.0, %v96_v0  ;;  %s107_s24 = int_to_ptr.vmem [resolvable:$true] %s106_s24 }
  0x2c   : > { %s208_s26 = scalar_lea.vmem %s107_s24, 128  ;;  %p215_p9 = scmp.lt.s32.totalorder %s107_s24, %s107_s24 }
  0x2d   : > { %98 = vst [vmem:[#allocation5] sm:$0xff] %v97_v1  ;;  %p209_p3 = scmp.ne.s32.totalorder %s107_s24, %s208_s26  ;;  %p216_p10 = scmp.lt.s32.totalorder %s208_s26, %s208_s26 }
  0x2f   : > { %p210_p5 = pnand %p209_p3, %p312_p2  ;;  %p217_p11 = por %p216_p10, %p215_p9 }
  0x31   : > { %p211_p7 = pneg %p210_p5 }
  0x33   : > { %p218_p12 = pnand %p217_p11, %p211_p7 }
  0x35   : > { %221 = shalt.err (!%p218_p12)
}
  0x36   : > { %s222_s29 = scalar_lea.hbm %s342_s1, 128 }
  0x37   : > { %p223_p13 = scmp.ne.s32.totalorder %s342_s1, %s222_s29  ;;  %p228_p4 = scmp.lt.u32.totalorder %s222_s29, %s342_s1 }
  0x39   : > { %p224_p0 = pnand %p223_p13, %p312_p2 }
  0x3b   : > { %p225_p1 = pneg %p224_p0 }
  0x3d   : > { %p230_p6 = pnand %p228_p4, %p225_p1 }
  0x3f   : > { %233 = shalt.err (!%p230_p6)
}
  0x40   : > { %159 = dma.vmem_to_hbm [thread:$0]  (%p312_p2), %s107_s24, 128, %s342_s1, [#allocation4]  }
  0x41   : > { %243 = dma.done.wait (%p312_p2), [#allocation4], 128  }
  0x42   : > { %245 = vsyncadd (%p312_p2), [#allocation4], 4294967168 }
  0x43 PF: > { %s13_s6 = sadd.s32 1, %s248_s6  }
  0x44   : > { %p10_p8 = scmp.ge.s32.totalorder %s13_s6, 4  }
  0x46   :  { %12 = sbr.rel (!%p10_p8) target bundleno = 2 (0x2), region = 53 }
  0x4d   :  { %119 = vsyncpa [#allocation3], 1 }
  0x4e   :  { %121 = vsyncpa [#allocation3 + $0x1], 1 }
  0x4f   :  { %122 = vsyncpa [#allocation4], 1 }
  0x50   :  { %124 = vsyncpa [#allocation4 + $0x1], 1 }

// kernel: tpu_custom_call.1
= control target key start
LH: loop header
LB: loop body
LE: loop exit
PB: predicated region body
PF: predicated region fallthrough
CT: control target
= control target key end

     0   :  { %s1997_s0 = inlined_call_operand.vmem [shape: f32[2,8,32], index: 0, kind: input, shape index: {}]   ;;  %s1998_s1 = inlined_call_operand.vmem [shape: f32[1,32], index: 1, kind: input, shape index: {}]   ;;  %s1999_s2 = inlined_call_operand.vmem [shape: f32[1,32], index: 2, kind: input, shape index: {}]   ;;  %s2000_s3 = inlined_call_operand.vmem [shape: bf16[32,96], index: 3, kind: input, shape index: {}]   ;;  %s2001_s4 = inlined_call_operand.vmem [shape: bf16[32,32], index: 4, kind: input, shape index: {}]   ;;  %s2002_s5 = inlined_call_operand.vmem [shape: f32[1,32], index: 5, kind: input, shape index: {}]   ;;  %s2003_s6 = inlined_call_operand.vmem [shape: f32[1,32], index: 6, kind: input, shape index: {}]   ;;  %s2004_s7 = inlined_call_operand.vmem [shape: bf16[32,128], index: 7, kind: input, shape index: {}]   ;;  %s2005_s8 = inlined_call_operand.vmem [shape: f32[1,128], index: 8, kind: input, shape index: {}]   ;;  %s2006_s9 = inlined_call_operand.vmem [shape: bf16[128,32], index: 9, kind: input, shape index: {}]   ;;  %s2007_s10 = inlined_call_operand.vmem [shape: f32[1,32], index: 10, kind: input, shape index: {}]   ;;  %s2008_s11 = inlined_call_operand.hbm [shape: f32[2,8,32], index: 11, kind: output, shape index: {}]  }
   0x1   :  { %2009 = sst [smem:[#allocation7_spill]] %s1997_s0 }
   0x2   :  { %16 = vsyncpa [#allocation5], 0 }
   0x3   :  { %18 = vsyncpa [#allocation5 + $0x1], 0  ;;  %s1730_s17 = smov 0   ;;  %s1732_s18 = smov 0  }
   0x4   :  { %s1734_s19 = smov 0   ;;  %s1736_s20 = smov 0  }
   0x5 LB: > { %s1751_s21 = sadd.s32 4294967295, %s1651_s20   ;;  %s1317_s22 = sadd.s32 4294967294, %s1651_s20   ;;  %s1651_s20 = sphi %s1736_s20, %s2016_s20   ;;  %s1647_s19 = sphi %s1734_s19, %s2015_s19   ;;  %s1643_s18 = sphi %s1732_s18, %s2014_s18   ;;  %s1639_s17 = sphi %s1730_s17, %s2013_s17  }
   0x6   : > { %s1755_s23 = sadd.s32 1, %s1651_s20   ;;  %s267_s24 = sadd.s32 1, %s1647_s19 }
   0x7   : > { %s264_s25 = ssub.s32 %s1651_s20, %s1755_s23  ;;  %p277_p0 = scmp.ne.s32.totalorder %s1647_s19, %s1643_s18 }
   0x8   : > { %p265_p1 = scmp.eq.s32.totalorder %s264_s25, 0  ;;  %p278_p2 = scmp.eq.s32.totalorder %s1751_s21, 1 }
   0x9   : > { %p283_p3 = scmp.ne.s32.totalorder %s1643_s18, %s1639_s17  ;;  %p284_p4 = scmp.eq.s32.totalorder %s1317_s22, 1 }
   0xa   : > { %s1766_s26 = scalar_select %p265_p1, %s1647_s19, %s267_s24  }
   0xb   : > { %p1768_p5 = por %p278_p2, %p277_p0  ;;  %p1772_p6 = por %p284_p4, %p283_p3 }
   0xc   : > { %p1320_p7 = scmp.ge.s32.totalorder %s1651_s20, 1  ;;  %p339_p8 = scmp.lt.s32.totalorder %s1651_s20, 3 }
   0xe   : > { %p340_p9 = pnand %p1320_p7, %p339_p8 }
   0xf   : > { %p378_p10 = scmp.lt.s32.totalorder (!%p340_p9), %s1751_s21, 1  ;;  %vm386_vm0 = vcmask (!%p340_p9), 261120   ;;  %s2012_s0 = sld [smem:[#allocation7_spill]] (!%p340_p9)  ;;  %v1549_v7 = vld [vmem:[%s2000_s3] sm:$0xff] (!%p340_p9)   ;;  %v1653_v8 = vmov (!%p340_p9), 0.0   ;;  %vm1654_vm1 = vmmov (!%p340_p9), 0  }
  0x10   : > { %343 = sbr.rel (%p340_p9) target bundleno = 2611 (0xa33), region = 64  ;;  %1402 = vmatprep.subr.bf16.mxu0 (!%p340_p9), %v1653_v8  ;;  %1406 = vmatprep.mubr.msk.bf16.mxu0 (!%p340_p9), %vm1654_vm1, %v1653_v8  ;;  %v1550_v9 = vld [vmem:[%s2000_s3 + $0x8] sm:$0xff] (!%p340_p9)   ;;  %v1323_v14 = vld [vmem:[%s1998_s1] ss:$0 sm:$0xff] (!%p340_p9)  ;;  %vm476_vm2 = vcmask (!%p340_p9), 781312   ;;  %s1655_s13 = smov (!%p340_p9), 120  }
  0x11   : > { %1403 = vmatpush3.bf16.msra.mxu0 (!%p340_p9), %v1549_v7  ;;  %1422 = vmatprep.subr.bf16.mxu1 (!%p340_p9), %v1653_v8  ;;  %v1324_v16 = vld [vmem:[%s1999_s2] ss:$0 sm:$0xff] (!%p340_p9)  ;;  %s1657_s15 = smov (!%p340_p9), 88   ;;  %s1658_s16 = smov (!%p340_p9), 80   ;;  %vm484_vm3 = vcmask (!%p340_p9), 64512   ;;  %vm549_vm4 = vcmask (!%p340_p9), 1043456  }
  0x12   : > { %1404 = vmatprep.subr.bf16.mxu0 (!%p340_p9), %v1653_v8  ;;  %1424 = vmatprep.mubr.msk.bf16.mxu1 (!%p340_p9), %vm1654_vm1, %v1653_v8  ;;  %s1659_s22 = smov (!%p340_p9), 112   ;;  %s1660_s24 = smov (!%p340_p9), 72   ;;  %vm594_vm5 = vcmask (!%p340_p9), 60416   ;;  %vm718_vm6 = vcmask (!%p340_p9), 126016   ;;  %vm842_vm7 = vcmask (!%p340_p9), 191616   ;;  %vm966_vm8 = vcmask (!%p340_p9), 257216  }
  0x13   : > { %s1661_s25 = smov (!%p340_p9), 104   ;;  %s1664_s12 = smov (!%p340_p9), 48  }
  0x15   : > { %1405 = vmatpush3.bf16.msra.mxu0 (!%p340_p9), %v1550_v9 }
  0x16   : > { %1410 = vmatprep.subr.bf16.mxu0 (!%p340_p9), %v1653_v8 }
  0x17   : > { %s379_s29 = scalar_select %p378_p10, %s1751_s21, 1 }
  0x19   : > { %s1322_s30 = sshll.u32 %s379_s29, 3  ;;  %s1662_s29 = smov 64  }
  0x1a   : > { %s381_s14 = scalar_lea.vmem %s2012_s0, %s1322_s30  ;;  %s1663_s30 = smov 56  }
  0x1b   : > { %v1783_v0 = vld [vmem:[%s381_s14] sm:$0xff]  ;;  %s1656_s14 = smov 96  }
  0x1c   : > { %v387_v1 = vsel %vm386_vm0, %v1783_v0, 0.0 }
  0x1d   : > { %388 = vadd.xlane.f32.xlu0 %v387_v1 }
  0xaa   : > { %v389_v2 = vpop.xlane.xlu0 %388 }
  0xab   : > { %v391_v3 = vmul.f32 0.03125, %v389_v2 }
  0xad   : > { %v392_v4 = vsub.f32 %v1783_v0, %v391_v3 }
  0xaf   : > { %v393_v5 = vmul.f32 %v392_v4, %v392_v4 }
  0xb1   : > { %v394_v6 = vsel %vm386_vm0, %v393_v5, 0.0 }
  0xb2   : > { %395 = vadd.xlane.f32.xlu0 %v394_v6 }
 0x13f   : > { %v396_v10 = vpop.xlane.xlu0 %395 }
 0x140   : > { %v397_v11 = vmul.f32 0.03125, %v396_v10 }
 0x142   : > { %v398_v12 = vadd.f32 1e-05, %v397_v11 }
 0x144   : > { %1567 = vrsqrt.f32 %v398_v12 }
 0x14e   : > { %v1568_v13 = vpop.eup %1567 }
 0x14f   : > { %v400_v15 = vmul.f32 %v1568_v13, %v392_v4 }
 0x151   : > { %v407_v17 = vmul.f32 %v1323_v14, %v400_v15 }
 0x153   : > { %v414_v18 = vadd.f32 %v1324_v16, %v407_v17 }
 0x155   : > { %v415_v19 = vpack.c.bf16 %v414_v18, %v414_v18 }
 0x157   : > { %1407 = vmatmul.mubr.msk.bf16.vlgmr.msra.gmra.mrb[0].mxu0 %vm386_vm0, %v415_v19 }
 0x158   : > { %1412 = vmatprep.mubr.msk.bf16.mxu0 %vm1654_vm1, %v1653_v8 }
 0x22a   : > { %v469_v20 = vpop.f32.mrb[0].mxu0 }
 0x22b   : > { %v475_v21 = vpack.c.bf16 %v469_v20, %v469_v20  ;;  %v1408_v22 = vpop.f32.mrb[1].mxu0 }
 0x22c   : > { %v472_v23 = vpop.f32.mrb[2].mxu0 }
 0x22d   : > { %477 = vst.msk [vmem:[#allocation2] sm:$0xf] %vm476_vm2, %v475_v21  ;;  %v1409_v24 = vpop.f32.mrb[3].mxu0 }
 0x234   : > { %v1812_v25 = vld [vmem:[#allocation2] ss:$0 sps:$4 sm:$0xff]  }
 0x235   : > { %v478_v26 = vld [vmem:[#allocation2] sm:$0xf]  ;;  %600 = vrot.lane.b32.xlu0 %v1812_v25, %s1655_s13  ;;  %s1665_s13 = smov 40  }
 0x236   : > { %v1814_v27 = vcombine.low %v478_v26, %v478_v26  ;;  %v1819_v28 = vld [vmem:[#allocation2] ss:$0 sps:$4 sm:$0xff]  }
 0x237   : > { %v1823_v29 = vld [vmem:[#allocation2] ss:$0 sps:$4 sm:$0xff]  }
 0x238   : > { %482 = vrot.lane.b32.xlu1 %v1814_v27, %s1656_s14  ;;  %s1666_s14 = smov 8  }
 0x23c   : > { %602 = vrot.lane.b32.xlu1 %v1812_v25, %s1657_s15 }
 0x240   : > { %726 = vrot.lane.b32.xlu1 %v1819_v28, %s1658_s16 }
 0x244   : > { %724 = vrot.lane.b32.xlu1 %v1819_v28, %s1659_s22  ;;  %s375_s22 = sand.u32 1, %s1643_s18  }
 0x248   : > { %850 = vrot.lane.b32.xlu1 %v1823_v29, %s1660_s24  ;;  %s1321_s24 = sshll.u32 %s375_s22, 3 }
 0x24c   : > { %848 = vrot.lane.b32.xlu1 %v1823_v29, %s1661_s25  ;;  %s1667_s25 = smov 16  }
 0x2a7   : > { %v601_v35 = vpop.permute.xlu0 %600 }
 0x2aa   : > { %v483_v30 = vpop.permute.xlu1 %482 }
 0x2ab   : > { %v489_v31 = vsel %vm484_vm3, %v483_v30, 0 }
 0x2ac   : > { %1411 = vmatpush3.bf16.xpose.msra.mxu0 %v489_v31 }
 0x2ad   : > { %1416 = vmatprep.subr.bf16.mxu0 %v1653_v8 }
 0x2ae   : > { %v603_v32 = vpop.permute.xlu1 %602 }
 0x2af   : > { %v608_v33 = vsel %vm484_vm3, %v603_v32, 0 }
 0x2b0   : > { %1423 = vmatpush3.bf16.xpose.msra.mxu1 %v608_v33 }
 0x2b1   : > { %1434 = vmatprep.subr.bf16.mxu1 %v1653_v8 }
 0x2b2   : > { %v727_v34 = vpop.permute.xlu1 %726 }
 0x2b3   : > { %1413 = vmatmul.mubr.msk.bf16.vlgmr.msra.gmra.mrb[4].mxu0 %vm484_vm3, %v478_v26  ;;  %v732_v37 = vsel %vm484_vm3, %v727_v34, 0 }
 0x2b4   : > { %1418 = vmatprep.mubr.msk.bf16.mxu0 %vm1654_vm1, %v1653_v8 }
 0x2b6   : > { %v725_v36 = vpop.permute.xlu1 %724 }
 0x2b7   : > { %1425 = vmatmul.mubr.msk.bf16.vlgmr.msra.gmra.mrb[0].mxu1 %vm484_vm3, %v601_v35 }
 0x2b8   : > { %1435 = vmatpush3.bf16.xpose.msra.mxu1 %v732_v37  ;;  %1436 = vmatprep.mubr.msk.bf16.mxu1 %vm1654_vm1, %v1653_v8 }
 0x2b9   : > { %1446 = vmatprep.subr.bf16.mxu1 %v1653_v8 }
 0x2ba   : > { %v851_v38 = vpop.permute.xlu1 %850 }
 0x2bb   : > { %v856_v39 = vsel %vm484_vm3, %v851_v38, 0 }
 0x2be   : > { %v849_v40 = vpop.permute.xlu1 %848 }
 0x2bf   : > { %1437 = vmatmul.mubr.msk.bf16.vlgmr.msra.gmra.mrb[4].mxu1 %vm484_vm3, %v725_v36 }
 0x2c0   : > { %1447 = vmatpush3.bf16.xpose.msra.mxu1 %v856_v39  ;;  %1448 = vmatprep.mubr.msk.bf16.mxu1 %vm1654_vm1, %v1653_v8 }
 0x2c1   : > { %1458 = vmatprep.subr.bf16.mxu1 %v1653_v8 }
 0x2c7   : > { %1449 = vmatmul.mubr.msk.bf16.vlgmr.msra.gmra.mrb[8].mxu1 %vm484_vm3, %v849_v40 }
 0x2c8   : > { %1462 = vmatprep.mubr.msk.bf16.mxu1 %vm1654_vm1, %v1653_v8 }
 0x386   : > { %v525_v41 = vpop.f32.mrb[4].mxu0 }
 0x387   : > { %v531_v42 = vmul.f32 0.35355338, %v525_v41  ;;  %v1414_v43 = vpop.f32.mrb[5].mxu0 }
 0x388   : > { %v528_v44 = vpop.f32.mrb[6].mxu0 }
 0x389   : > { %v1415_v45 = vpop.f32.mrb[7].mxu0  ;;  %v532_v46 = vsel %vm484_vm3, %v531_v42, -inf }
 0x38a   : > { %v644_v47 = vpop.f32.mrb[0].mxu1  ;;  %533 = vmax.xlane.f32.xlu1 %v532_v46 }
 0x38b   : > { %v650_v48 = vmul.f32 0.35355338, %v644_v47  ;;  %v1426_v49 = vpop.f32.mrb[1].mxu1 }
 0x38c   : > { %v647_v50 = vpop.f32.mrb[2].mxu1 }
 0x38d   : > { %v1427_v51 = vpop.f32.mrb[3].mxu1  ;;  %v651_v52 = vsel %vm484_vm3, %v650_v48, -inf }
 0x38e   : > { %652 = vmax.xlane.f32.xlu0 %v651_v52 }
 0x392   : > { %v768_v53 = vpop.f32.mrb[4].mxu1 }
 0x393   : > { %v774_v54 = vmul.f32 0.35355338, %v768_v53  ;;  %v1438_v55 = vpop.f32.mrb[5].mxu1 }
 0x394   : > { %v771_v56 = vpop.f32.mrb[6].mxu1 }
 0x395   : > { %v1439_v57 = vpop.f32.mrb[7].mxu1  ;;  %v775_v58 = vsel %vm484_vm3, %v774_v54, -inf }
 0x396   : > { %776 = vmax.xlane.f32.xlu1 %v775_v58  ;;  %v1555_v57 = vld [vmem:[%s2001_s4] sm:$0xff]  }
 0x397   : > { %1459 = vmatpush3.bf16.msra.mxu1 %v1555_v57 }
 0x398   : > { %1460 = vmatprep.subr.bf16.mxu1 %v1653_v8 }
 0x39a   : > { %v892_v59 = vpop.f32.mrb[8].mxu1 }
 0x39b   : > { %v898_v60 = vmul.f32 0.35355338, %v892_v59  ;;  %v1450_v61 = vpop.f32.mrb[9].mxu1  ;;  %v1556_v59 = vld [vmem:[%s2001_s4 + $0x8] sm:$0xff]  }
 0x39c   : > { %v895_v62 = vpop.f32.mrb[10].mxu1  ;;  %1461 = vmatpush3.bf16.msra.mxu1 %v1556_v59 }
 0x39d   : > { %v1451_v63 = vpop.f32.mrb[11].mxu1  ;;  %v899_v1 = vsel %vm484_vm3, %v898_v60, -inf  ;;  %1474 = vmatprep.subr.bf16.mxu1 %v1653_v8 }
 0x39e   : > { %900 = vmax.xlane.f32.xlu0 %v899_v1 }
 0x417   : > { %v534_v2 = vpop.xlane.xlu1 %533 }
 0x418   : > { %v535_v3 = vsub.f32 %v531_v42, %v534_v2 }
 0x41a   : > { %v536_v4 = vmul.f32 1.442695, %v535_v3 }
 0x41b   : > { %v653_v5 = vpop.xlane.xlu0 %652 }
 0x41c   : > { %1569 = vpow2.f32 %v536_v4  ;;  %v654_v6 = vsub.f32 %v650_v48, %v653_v5 }
 0x41e   : > { %v655_v7 = vmul.f32 1.442695, %v654_v6 }
 0x420   : > { %1571 = vpow2.f32 %v655_v7 }
 0x423   : > { %v777_v18 = vpop.xlane.xlu1 %776 }
 0x424   : > { %v778_v19 = vsub.f32 %v774_v54, %v777_v18 }
 0x426   : > { %v1570_v9 = vpop.eup %1569  ;;  %v779_v20 = vmul.f32 1.442695, %v778_v19 }
 0x427   : > { %v538_v10 = vsel %vm484_vm3, %v1570_v9, 0.0 }
 0x428   : > { %539 = vadd.xlane.f32.xlu1 %v538_v10 }
 0x42a   : > { %v1572_v11 = vpop.eup %1571 }
 0x42b   : > { %v901_v12 = vpop.xlane.xlu0 %900  ;;  %v657_v13 = vsel %vm484_vm3, %v1572_v11, 0.0 }
 0x42c   : > { %v902_v14 = vsub.f32 %v898_v60, %v901_v12  ;;  %658 = vadd.xlane.f32.xlu0 %v657_v13 }
 0x42e   : > { %v903_v15 = vmul.f32 1.442695, %v902_v14 }
 0x430   : > { %1573 = vpow2.f32 %v903_v15 }
 0x431   : > { %1575 = vpow2.f32 %v779_v20 }
 0x439   : > { %544 = vrot.lane.b32.xlu1 %v1814_v27, %s1662_s29  ;;  %s1668_s29 = smov 24  }
 0x43a   : > { %v1574_v16 = vpop.eup %1573 }
 0x43b   : > { %v905_v17 = vsel %vm484_vm3, %v1574_v16, 0.0  ;;  %v1576_v21 = vpop.eup %1575 }
 0x43c   : > { %906 = vadd.xlane.f32.xlu0 %v905_v17  ;;  %v781_v22 = vsel %vm484_vm3, %v1576_v21, 0.0 }
 0x452   : > { %663 = vrot.lane.b32.xlu0 %v1812_v25, %s1663_s30  ;;  %s1362_s30 = sshll.u32 %s1751_s21, 7  ;;  %s1245_s21 = scalar_lea.sflag [#allocation5], %s375_s22 }
 0x453   : > { %s1954_s16 = scalar_lea.hbm %s2008_s11, %s1362_s30 }
 0x45d   : > { %782 = vadd.xlane.f32.xlu1 %v781_v22  ;;  %v1558_v22 = vld [vmem:[%s2004_s7 + $0x8] sm:$0xff]  }
 0x46e   : > { %787 = vrot.lane.b32.xlu1 %v1819_v28, %s1664_s12  ;;  %s377_s12 = scalar_lea.vmem [#allocation4], %s1321_s24 }
 0x472   : > { %911 = vrot.lane.b32.xlu1 %v1823_v29, %s1665_s13  ;;  %s1258_s13 = sshll.u32 %s377_s12, 4  ;;  %s1956_s13 = int_to_ptr.vmem [resolvable:$true] %s1258_s13 }
 0x473   : > { %s1589_s24 = scalar_lea.vmem %s1956_s13, 128 }
 0x474   : > { %p1590_p11 = scmp.ne.s32.totalorder %s1956_s13, %s1589_s24 }
 0x476   : > { %p1591_p12 = pnand %p1590_p11, %p1768_p5 }
 0x478   : > { %p1592_p13 = pneg %p1591_p12 }
 0x4b5   : > { %v540_v23 = vpop.xlane.xlu1 %539 }
 0x4b6   : > { %1577 = vrcp.f32 %v540_v23  ;;  %v1559_v23 = vld [vmem:[%s2006_s9] sm:$0xff]  }
 0x4b9   : > { %v545_v24 = vpop.permute.xlu1 %544  ;;  %v659_v27 = vpop.xlane.xlu0 %658 }
 0x4ba   : > { %v551_v26 = vsel %vm549_vm4, %v545_v24, 0  ;;  %1579 = vrcp.f32 %v659_v27  ;;  %v1560_v24 = vld [vmem:[%s2006_s9 + $0x8] sm:$0xff]  }
 0x4bb   : > { %1417 = vmatpush3.bf16.msra.mxu0 %v551_v26  ;;  %v1561_v26 = vld [vmem:[%s2006_s9 + $0x10] sm:$0xff]  }
 0x4bc   : > { %1428 = vmatprep.subr.bf16.mxu0 %v1653_v8 }
 0x4c0   : > { %v1578_v25 = vpop.eup %1577 }
 0x4c1   : > { %v542_v30 = vmul.f32 %v1578_v25, %v1570_v9 }
 0x4c3   : > { %v543_v31 = vpack.c.bf16 %v542_v30, %v542_v30 }
 0x4c4   : > { %v1580_v28 = vpop.eup %1579 }
 0x4c5   : > { %1419 = vmatmul.mubr.msk.bf16.vlgmr.msra.gmra.mrb[8].mxu0 %vm484_vm3, %v543_v31  ;;  %v661_v32 = vmul.f32 %v1580_v28, %v1572_v11  ;;  %v1346_v28 = vld [vmem:[%s2002_s5] ss:$0 sm:$0xff] }
 0x4c6   : > { %1430 = vmatprep.mubr.msk.bf16.mxu0 %vm1654_vm1, %v1653_v8 }
 0x4c7   : > { %v662_v35 = vpack.c.bf16 %v661_v32, %v661_v32  ;;  %v1347_v32 = vld [vmem:[%s2003_s6] ss:$0 sm:$0xff] }
 0x4c9   : > { %v907_v29 = vpop.xlane.xlu0 %906 }
 0x4cd   : > { %v664_v33 = vpop.permute.xlu0 %663 }
 0x4ce   : > { %v669_v34 = vsel %vm549_vm4, %v664_v33, 0 }
 0x4cf   : > { %1429 = vmatpush3.bf16.msra.mxu0 %v669_v34 }
 0x4d0   : > { %1440 = vmatprep.subr.bf16.mxu0 %v1653_v8 }
 0x4d2   : > { %1431 = vmatmul.mubr.msk.bf16.vlgmr.msra.gmra.mrb[12].mxu0 %vm484_vm3, %v662_v35 }
 0x4d3   : > { %1442 = vmatprep.mubr.msk.bf16.mxu0 %vm1654_vm1, %v1653_v8 }
 0x4ea   : > { %v783_v36 = vpop.xlane.xlu1 %782 }
 0x4eb   : > { %1581 = vrcp.f32 %v783_v36  ;;  %v1562_v36 = vld [vmem:[%s2006_s9 + $0x18] sm:$0xff]  }
 0x4ec   : > { %1583 = vrcp.f32 %v907_v29 }
 0x4ee   : > { %v788_v37 = vpop.permute.xlu1 %787 }
 0x4ef   : > { %v793_v38 = vsel %vm549_vm4, %v788_v37, 0  ;;  %v1563_v37 = vld [vmem:[%s2006_s9 + $0x20] sm:$0xff]  }
 0x4f0   : > { %1441 = vmatpush3.bf16.msra.mxu0 %v793_v38  ;;  %v1564_v38 = vld [vmem:[%s2006_s9 + $0x28] sm:$0xff]  }
 0x4f1   : > { %1452 = vmatprep.subr.bf16.mxu0 %v1653_v8 }
 0x4f2   : > { %v912_v41 = vpop.permute.xlu1 %911 }
 0x4f3   : > { %v917_v44 = vsel %vm549_vm4, %v912_v41, 0  ;;  %v1348_v41 = vld [vmem:[%s2005_s8] ss:$0 sm:$0xff] }
 0x4f5   : > { %v1582_v39 = vpop.eup %1581 }
 0x4f6   : > { %v785_v40 = vmul.f32 %v1582_v39, %v1576_v21  ;;  %v1584_v43 = vpop.eup %1583  ;;  %v1565_v39 = vld [vmem:[%s2006_s9 + $0x30] sm:$0xff]  }
 0x4f7   : > { %v909_v45 = vmul.f32 %v1584_v43, %v1574_v16 }
 0x4f8   : > { %v786_v42 = vpack.c.bf16 %v785_v40, %v785_v40  ;;  %v1566_v40 = vld [vmem:[%s2006_s9 + $0x38] sm:$0xff]  }
 0x4f9   : > { %v910_v46 = vpack.c.bf16 %v909_v45, %v909_v45 }
 0x4fa   : > { %1443 = vmatmul.mubr.msk.bf16.vlgmr.msra.gmra.mrb[16].mxu0 %vm484_vm3, %v786_v42 }
 0x4fb   : > { %1453 = vmatpush3.bf16.msra.mxu0 %v917_v44  ;;  %1454 = vmatprep.mubr.msk.bf16.mxu0 %vm1654_vm1, %v1653_v8 }
 0x4fc   : > { %1466 = vmatprep.subr.bf16.mxu0 %v1653_v8 }
 0x502   : > { %1455 = vmatmul.mubr.msk.bf16.vlgmr.msra.gmra.mrb[20].mxu0 %vm484_vm3, %v910_v46 }
 0x503   : > { %1470 = vmatprep.mubr.msk.bf16.mxu0 %vm1654_vm1, %v1653_v8 }
 0x598   : > { %v587_v47 = vpop.f32.mrb[8].mxu0 }
 0x599   : > { %v593_v48 = vpack.c.bf16 %v587_v47, %v587_v47  ;;  %v1420_v49 = vpop.f32.mrb[9].mxu0 }
 0x59a   : > { %v590_v50 = vpop.f32.mrb[10].mxu0 }
 0x59b   : > { %595 = vst.msk [vmem:[#allocation3] sm:$0xf] %vm594_vm5, %v593_v48  ;;  %v1421_v51 = vpop.f32.mrb[11].mxu0 }
 0x5a5   : > { %v705_v52 = vpop.f32.mrb[12].mxu0 }
 0x5a6   : > { %v1365_v53 = vpack.c.bf16 %v705_v52, %v705_v52  ;;  %v1432_v54 = vpop.f32.mrb[13].mxu0  ;;  %v1352_v52 = vld [vmem:[%s2007_s10] ss:$0 sm:$0xff] }
 0x5a7   : > { %v708_v55 = vpop.f32.mrb[14].mxu0 }
 0x5a8   : > { %715 = vrot.lane.b32.xlu0 %v1365_v53, %s1666_s14  ;;  %v1433_v56 = vpop.f32.mrb[15].mxu0 }
 0x5cd   : > { %v829_v58 = vpop.f32.mrb[16].mxu0 }
 0x5ce   : > { %v1366_v60 = vpack.c.bf16 %v829_v58, %v829_v58  ;;  %v1444_v61 = vpop.f32.mrb[17].mxu0 }
 0x5cf   : > { %v832_v62 = vpop.f32.mrb[18].mxu0 }
 0x5d0   : > { %839 = vrot.lane.b32.xlu1 %v1366_v60, %s1667_s25  ;;  %v1445_v63 = vpop.f32.mrb[19].mxu0  ;;  %s1669_s25 = smov [#allocation4]  }
 0x5d5   : > { %v953_v1 = vpop.f32.mrb[20].mxu0 }
 0x5d6   : > { %v1367_v2 = vpack.c.bf16 %v953_v1, %v953_v1  ;;  %v1456_v3 = vpop.f32.mrb[21].mxu0 }
 0x5d7   : > { %v956_v4 = vpop.f32.mrb[22].mxu0 }
 0x5d8   : > { %963 = vrot.lane.b32.xlu0 %v1367_v2, %s1668_s29  ;;  %v1457_v5 = vpop.f32.mrb[23].mxu0  ;;  %s1593_s29 = sshll.u32 %s1669_s25, 4  ;;  %s1594_s29 = int_to_ptr.vmem [resolvable:$false] %s1593_s29 }
 0x5d9   : > { %s1595_s0 = scalar_lea.vmem %s1594_s29, 256  ;;  %p1596_p0 = scmp.lt.s32.totalorder %s1956_s13, %s1594_s29 }
 0x5da   : > { %p1597_p1 = scmp.lt.s32.totalorder %s1595_s0, %s1589_s24 }
 0x5dc   : > { %p1598_p2 = por %p1597_p1, %p1596_p0 }
 0x5de   : > { %p1599_p3 = pnand %p1598_p2, %p1592_p13 }
 0x61a   : > { %v716_v6 = vpop.permute.xlu0 %715 }
 0x61b   : > { %719 = vst.msk [vmem:[#allocation3] sm:$0xf] %vm718_vm6, %v716_v6 }
 0x642   : > { %v840_v7 = vpop.permute.xlu1 %839 }
 0x643   : > { %843 = vst.msk [vmem:[#allocation3] sm:$0xf] %vm842_vm7, %v840_v7 }
 0x64a   : > { %v964_v9 = vpop.permute.xlu0 %963 }
 0x64b   : > { %967 = vst.msk [vmem:[#allocation3] sm:$0xf] %vm966_vm8, %v964_v9 }
 0x652   : > { %v968_v10 = vld [vmem:[#allocation3] sm:$0xf] }
 0x653   : > { %1463 = vmatmul.mubr.msk.bf16.vlgmr.msra.gmra.mrb[12].mxu1 %vm386_vm0, %v968_v10 }
 0x654   : > { %1490 = vmatprep.mubr.msk.bf16.mxu1 %vm1654_vm1, %v1653_v8  ;;  %1475 = vmatpush3.bf16.msra.mxu1 %v1559_v23 }
 0x655   : > { %1476 = vmatprep.subr.bf16.mxu1 %v1653_v8 }
 0x658   : > { %1477 = vmatpush3.bf16.msra.mxu1 %v1560_v24 }
 0x659   : > { %1478 = vmatprep.subr.bf16.mxu1 %v1653_v8 }
 0x65c   : > { %1479 = vmatpush3.bf16.msra.mxu1 %v1561_v26 }
 0x65d   : > { %1480 = vmatprep.subr.bf16.mxu1 %v1653_v8 }
 0x660   : > { %1481 = vmatpush3.bf16.msra.mxu1 %v1562_v36 }
 0x661   : > { %1482 = vmatprep.subr.bf16.mxu1 %v1653_v8 }
 0x664   : > { %1483 = vmatpush3.bf16.msra.mxu1 %v1563_v37 }
 0x665   : > { %1484 = vmatprep.subr.bf16.mxu1 %v1653_v8 }
 0x668   : > { %1485 = vmatpush3.bf16.msra.mxu1 %v1564_v38 }
 0x669   : > { %1486 = vmatprep.subr.bf16.mxu1 %v1653_v8 }
 0x66c   : > { %1487 = vmatpush3.bf16.msra.mxu1 %v1565_v39 }
 0x66d   : > { %1488 = vmatprep.subr.bf16.mxu1 %v1653_v8 }
 0x670   : > { %1489 = vmatpush3.bf16.msra.mxu1 %v1566_v40 }
 0x726   : > { %v1022_v11 = vpop.f32.mrb[12].mxu1 }
 0x727   : > { %v1891_v12 = vadd.f32 %v1022_v11, %v1783_v0  ;;  %v1464_v13 = vpop.f32.mrb[13].mxu1  ;;  %v1557_v0 = vld [vmem:[%s2004_s7] sm:$0xff]  }
 0x728   : > { %v1025_v14 = vpop.f32.mrb[14].mxu1  ;;  %1467 = vmatpush3.bf16.msra.mxu0 %v1557_v0 }
 0x729   : > { %v1465_v15 = vpop.f32.mrb[15].mxu1  ;;  %v1031_v16 = vsel %vm386_vm0, %v1891_v12, 0.0  ;;  %1468 = vmatprep.subr.bf16.mxu0 %v1653_v8 }
 0x72a   : > { %1032 = vadd.xlane.f32.xlu1 %v1031_v16 }
 0x72c   : > { %1469 = vmatpush3.bf16.msra.mxu0 %v1558_v22 }
 0x7b7   : > { %v1033_v17 = vpop.xlane.xlu1 %1032 }
 0x7b8   : > { %v1034_v18 = vmul.f32 0.03125, %v1033_v17 }
 0x7ba   : > { %v1035_v19 = vsub.f32 %v1891_v12, %v1034_v18 }
 0x7bc   : > { %v1036_v20 = vmul.f32 %v1035_v19, %v1035_v19 }
 0x7be   : > { %v1037_v21 = vsel %vm386_vm0, %v1036_v20, 0.0 }
 0x7bf   : > { %1038 = vadd.xlane.f32.xlu0 %v1037_v21 }
 0x84c   : > { %v1039_v27 = vpop.xlane.xlu0 %1038 }
 0x84d   : > { %v1040_v25 = vmul.f32 0.03125, %v1039_v27 }
 0x84f   : > { %v1041_v30 = vadd.f32 1e-05, %v1040_v25 }
 0x851   : > { %1585 = vrsqrt.f32 %v1041_v30 }
 0x85b   : > { %v1586_v31 = vpop.eup %1585 }
 0x85c   : > { %v1043_v29 = vmul.f32 %v1586_v31, %v1035_v19 }
 0x85e   : > { %v1050_v33 = vmul.f32 %v1346_v28, %v1043_v29 }
 0x860   : > { %v1057_v34 = vadd.f32 %v1347_v32, %v1050_v33 }
 0x862   : > { %v1058_v35 = vpack.c.bf16 %v1057_v34, %v1057_v34 }
 0x864   : > { %1471 = vmatmul.mubr.msk.bf16.vlgmr.msra.gmra.mrb[24].mxu0 %vm386_vm0, %v1058_v35 }
 0x937   : > { %v1119_v42 = vpop.f32.mrb[24].mxu0 }
 0x938   : > { %v1120_v43 = vadd.f32 %v1348_v41, %v1119_v42  ;;  %v1472_v44 = vpop.f32.mrb[25].mxu0 }
 0x939   : > { %v1122_v45 = vpop.f32.mrb[26].mxu0 }
 0x93a   : > { %v1126_v46 = vmul.f32 0.70710677, %v1120_v43  ;;  %v1473_v47 = vpop.f32.mrb[27].mxu0  ;;  %v1125_v8 = vmul.f32 0.5, %v1120_v43 }
 0x93c   : > { %1587 = verf.f32 %v1126_v46 }
 0x946   : > { %v1588_v48 = vpop.eup %1587 }
 0x947   : > { %v1128_v49 = vadd.f32 1.0, %v1588_v48 }
 0x949   : > { %v1129_v50 = vmul.f32 %v1128_v49, %v1125_v8 }
 0x94b   : > { %v1130_v51 = vpack.c.bf16 %v1129_v50, %v1129_v50 }
 0x94d   : > { %1491 = vmatmul.mubr.bf16.vlgmr.msra.gmra.mrb[16].mxu1 %v1130_v51 }
 0xa20   : > { %v1236_v53 = vpop.f32.mrb[16].mxu1 }
 0xa21   : > { %v1237_v54 = vadd.f32 %v1352_v52, %v1236_v53  ;;  %v1492_v55 = vpop.f32.mrb[17].mxu1 }
 0xa22   : > { %v1239_v56 = vpop.f32.mrb[18].mxu1 }
 0xa23   : > { %v1242_v57 = vadd.f32 %v1237_v54, %v1891_v12  ;;  %v1493_v58 = vpop.f32.mrb[19].mxu1 }
 0xa25   : > { %1243 = vst.msk [vmem:[%s377_s12] sm:$0xff] %vm386_vm0, %v1242_v57 }
 0xa26   : > { %1602 = shalt.err (!%p1599_p3)
}
 0xa27   : > { %s1603_s22 = scalar_lea.hbm %s1954_s16, 128  ;;  %s1607_s14 = scalar_lea.hbm %s2008_s11, 256 }
 0xa28   : > { %p1604_p4 = scmp.ne.s32.totalorder %s1954_s16, %s1603_s22  ;;  %p1608_p9 = scmp.lt.u32.totalorder %s1954_s16, %s2008_s11 }
 0xa29   : > { %p1609_p10 = scmp.lt.u32.totalorder %s1607_s14, %s1603_s22  ;;  %p1611_p12 = scmp.lt.u32.totalorder %s1603_s22, %s1954_s16 }
 0xa2a   : > { %p1605_p7 = pnand %p1604_p4, %p1768_p5 }
 0xa2b   : > { %p1610_p11 = por %p1609_p10, %p1608_p9 }
 0xa2c   : > { %p1606_p8 = pneg %p1605_p7 }
 0xa2d   : > { %p1612_p13 = por %p1611_p12, %p1610_p11 }
 0xa2f   : > { %p1613_p0 = pnand %p1612_p13, %p1606_p8 }
 0xa31   : > { %1616 = shalt.err (!%p1613_p0)
}
 0xa32   : > { %1494 = dma.vmem_to_hbm [thread:$0]  (%p1768_p5), %s1956_s13, 128, %s1954_s16, %s1245_s21  }
 0xa33 PF: > { %p1500_p1 = scmp.ge.s32.totalorder %s1651_s20, 2  ;;  %s1270_s0 = sand.u32 1, %s1639_s17  }
 0xa34   : > { %s1271_s24 = scalar_lea.sflag [#allocation5], %s1270_s0 }
 0xa35   : > { %p1497_p2 = pnand %p1500_p1, %p1772_p6 }
 0xa37   : > { %1634 = dma.done.wait (!%p1497_p2), %s1271_s24, 128  }
 0xa38   : > { %1636 = vsyncadd (!%p1497_p2), %s1271_s24, 4294967168  ;;  %p21_p3 = scmp.ge.s32.totalorder %s1755_s23, 4   ;;  %s2013_s17 = smov %s1643_s18 }
 0xa39   : > { %s2014_s18 = smov %s1647_s19  ;;  %s2015_s19 = smov %s1766_s26 }
 0xa3a   : > { %s2016_s20 = smov %s1755_s23  ;;  %23 = sbr.rel (!%p21_p3) target bundleno = 5 (0x5), region = 99 }
 0xa41   :  { %1276 = vsyncpa [#allocation5], 1 }
 0xa42   :  { %1278 = vsyncpa [#allocation5 + $0x1], 1 }

</bundles_post_ra>
